<compile_context>
chip_gen: v7x
topology: tpu7x:2x2x1
jax: 0.10.0
libtpu: 0.0.40
codegen_flags: <defaults>
</compile_context>

<pallas_src>
import functools

import jax
import jax.numpy as jnp
from jax.experimental import pallas as pl
from jax.experimental.pallas import tpu as pltpu


# ------------------------------ Pallas kernel ------------------------------ #
def _speech_input_kernel(x_ref, w_ref, pos_ref, o_ref, *, batch: int):
    """One row-tile of the fused SpeechInput forward.

    x_ref:   (tile_t * batch, in_dim)   bf16   time-major activation rows
    w_ref:   (in_dim, out_dim)          bf16   fused W1 @ W2 (resident, idx (0,0))
    pos_ref: (tile_t, out_dim)          f32    positional encoding + fused bias
    o_ref:   (tile_t * batch, out_dim)  f32
    """
    # Single MXU matmul for the whole tile, f32 accumulation.
    y = jnp.dot(x_ref[...], w_ref[...], preferred_element_type=jnp.float32)
    pos = pos_ref[...]
    tile_t = pos_ref.shape[0]
    # Epilogue: rows [j*batch, (j+1)*batch) all belong to time step j of this
    # tile and share pos[j]. This keeps the pos table at (T, out_dim) in HBM
    # (no batch broadcast) at the cost of a cheap unrolled VPU add per step.
    for j in range(tile_t):
        lo = j * batch
        o_ref[pl.ds(lo, batch), :] = (
            y[lo:lo + batch, :] + pos[j:j + 1, :]
        ).astype(o_ref.dtype)


# ------------------------------ forward wrapper ---------------------------- #
@functools.partial(jax.jit, static_argnames=("tile_t",))
def speech_input_forward(src, w1, b1, w2, b2, *, tile_t=None):
    """src: (B, in_dim, T) f32 -> (T, B, out_dim) f32 (matches the torch module)."""
    B, in_dim, T = src.shape
    out_dim = w2.shape[1]

    # --- wrapper-side algebra (tiny, fused by XLA) --------------------------
    # No nonlinearity between the Linears -> fold: y = x @ (W1 W2) + (b1 W2 + b2)
    w_fused = jnp.dot(w1, w2)                         # (in_dim, out_dim) f32
    b_fused = jnp.dot(b1, w2) + b2                    # (out_dim,)        f32
    # Fold the fused bias into the (T, out_dim) positional-encoding table.
    pos_b = _positional_encoding(T, out_dim) + b_fused[None, :]

    # Time-major activation rows; the permute is fused with the bf16 downcast
    # by XLA (input-sized glue only; output-sized traffic stays in the kernel).
    x = jnp.transpose(src, (2, 0, 1)).reshape(T * B, in_dim).astype(jnp.bfloat16)
    w_bf = w_fused.astype(jnp.bfloat16)

    # --- tiling --------------------------------------------------------------
    if tile_t is None:
        tile_t = max(8, ((512 // max(B, 1)) // 8) * 8)   # ~512-row tiles
    tile_t = max(8, min(tile_t, ((T + 7) // 8) * 8))
    assert tile_t % 8 == 0, "tile_t must be a multiple of 8 (sublane tiling)"

    n_tiles = pl.cdiv(T, tile_t)
    T_pad = n_tiles * tile_t
    if T_pad != T:
        x = jnp.pad(x, ((0, (T_pad - T) * B), (0, 0)))
        pos_b = jnp.pad(pos_b, ((0, T_pad - T), (0, 0)))

    tile_r = tile_t * B

    out_flat = pl.pallas_call(
        functools.partial(_speech_input_kernel, batch=B),
        out_shape=jax.ShapeDtypeStruct((T_pad * B, out_dim), jnp.float32),
        grid_spec=pltpu.PrefetchScalarGridSpec(
            num_scalar_prefetch=0,
            grid=(n_tiles,),
            in_specs=[
                pl.BlockSpec((tile_r, in_dim), lambda t: (t, 0)),    # x rows
                pl.BlockSpec((in_dim, out_dim), lambda t: (0, 0)),   # fused W
                pl.BlockSpec((tile_t, out_dim), lambda t: (t, 0)),   # pos+bias
            ],
            out_specs=pl.BlockSpec((tile_r, out_dim), lambda t: (t, 0)),
        ),
        compiler_params=pltpu.CompilerParams(
            dimension_semantics=("parallel",),   # row tiles are independent
            vmem_limit_bytes=32 * 1024 * 1024,   # headroom for larger tiles
        ),
    )(x, w_bf, pos_b)

    return out_flat[: T * B].reshape(T, B, out_dim)


# ------------------------ positional encoding (glue) ----------------------- #
def _positional_encoding(position, d_model):
    pos = jnp.arange(position, dtype=jnp.float32)[:, None]
    i = jnp.arange(d_model)[None, :]
    angle_rates = 1.0 / jnp.power(
        jnp.float32(10000.0),
        (2 * (i // 2)).astype(jnp.float32) / jnp.float32(d_model))
    angle_rads = pos * angle_rates
    even = (jnp.arange(d_model) % 2) == 0
    return jnp.where(even[None, :], jnp.sin(angle_rads), jnp.cos(angle_rads))


# ------------------------------ pure-JAX reference ------------------------- #
def _reference_forward(src, w1, b1, w2, b2):
    T = src.shape[-1]
    x = jnp.transpose(src, (2, 0, 1))                    # (T, B, in_dim)
    h = jnp.einsum("tbi,ih->tbh", x, w1) + b1
    y = jnp.einsum("tbh,ho->tbo", h, w2) + b2
    return y + _positional_encoding(T, w2.shape[1])[:, None, :]


# ------------------------------ parameter init ----------------------------- #
def _init_linear(key, fan_in, fan_out):
    # Matches nn.Linear default: U(-1/sqrt(fan_in), 1/sqrt(fan_in)).
    kw, kb = jax.random.split(key)
    bound = 1.0 / jnp.sqrt(jnp.float32(fan_in))
    w = jax.random.uniform(kw, (fan_in, fan_out), jnp.float32, -bound, bound)
    b = jax.random.uniform(kb, (fan_out,), jnp.float32, -bound, bound)
    return w, b


if __name__ == "__main__":
    B, in_dim, T = 8, 64, 64
    h_dim, out_dim = 128, 256

    root = jax.random.PRNGKey(0)
    k_src, k_l1, k_l2 = jax.random.split(root, 3)

    src = jax.random.normal(k_src, (B, in_dim, T), jnp.float32)
    w1, b1 = _init_linear(k_l1, in_dim, h_dim)
    w2, b2 = _init_linear(k_l2, h_dim, out_dim)

    out = speech_input_forward(src, w1, b1, w2, b2, tile_t=16)   # 4 row tiles
    jax.block_until_ready(out)
    assert out.shape == (T, B, out_dim)

    ref = _reference_forward(src, w1, b1, w2, b2)
    max_err = float(jnp.max(jnp.abs(out - ref)))
    # bf16 matmul operands + fused-matmul accumulation reordering vs f32 ref.
    assert max_err < 5e-2, f"max abs err too large: {max_err}"

    print("KERNEL_OK")
</pallas_src>

<mosaic_0001>
module attributes {stable_mosaic.version = 11 : i64} {
  func.func @_speech_input_kernel(%arg0: i32, %arg1: memref<128x64xbf16, #tpu.memory_space<vmem>>, %arg2: memref<64x256xbf16, #tpu.memory_space<vmem>>, %arg3: memref<16x256xf32, #tpu.memory_space<vmem>>, %arg4: memref<128x256xf32, #tpu.memory_space<vmem>>) attributes {dimension_semantics = [#tpu.dimension_semantics<parallel>], iteration_bounds = array<i64: 4>, scalar_prefetch = 0 : i64, scratch_operands = 0 : i64, tpu.core_type = #tpu.core_type<tc>, window_params = [{transform_indices = @transform_0, window_bounds = array<i64: 128, 64>}, {pipeline_mode = #tpu.pipeline_mode<synchronous>, transform_indices = @transform_1, window_bounds = array<i64: 64, 256>}, {transform_indices = @transform_2, window_bounds = array<i64: 16, 256>}, {transform_indices = @transform_3, window_bounds = array<i64: 128, 256>}]} {
    %c0 = arith.constant 0 : index
    %c0_0 = arith.constant 0 : index
    %0 = vector.load %arg1[%c0, %c0_0] : memref<128x64xbf16, #tpu.memory_space<vmem>>, vector<128x64xbf16>
    %c0_1 = arith.constant 0 : index
    %c0_2 = arith.constant 0 : index
    %1 = vector.load %arg2[%c0_1, %c0_2] : memref<64x256xbf16, #tpu.memory_space<vmem>>, vector<64x256xbf16>
    %cst = arith.constant dense<0.000000e+00> : vector<128x256xf32>
    %2 = tpu.matmul %0, %1, %cst {dimension_numbers = #tpu.dot_dimension_numbers<[1], [0], [0], [1], [0, 0, 1, 1], [], []>} : vector<128x64xbf16>, vector<64x256xbf16>, vector<128x256xf32> -> vector<128x256xf32>
    %c0_3 = arith.constant 0 : index
    %c0_4 = arith.constant 0 : index
    %3 = vector.load %arg3[%c0_3, %c0_4] : memref<16x256xf32, #tpu.memory_space<vmem>>, vector<16x256xf32>
    %4 = vector.extract_strided_slice %2 {offsets = [0, 0], sizes = [8, 256], strides = [1, 1]} : vector<128x256xf32> to vector<8x256xf32>
    %5 = vector.extract_strided_slice %3 {offsets = [0, 0], sizes = [1, 256], strides = [1, 1]} : vector<16x256xf32> to vector<1x256xf32>
    %6 = vector.broadcast %5 : vector<1x256xf32> to vector<8x256xf32>
    %7 = arith.addf %4, %6 : vector<8x256xf32>
    %c0_5 = arith.constant 0 : index
    %c0_6 = arith.constant 0 : index
    %8 = vector.load %arg4[%c0_5, %c0_6] : memref<128x256xf32, #tpu.memory_space<vmem>>, vector<8x256xf32>
    tpu.vector_store %arg4[%c0_5, %c0_6], %7 {strides = array<i32>} : memref<128x256xf32, #tpu.memory_space<vmem>>, vector<8x256xf32>,
    %9 = vector.extract_strided_slice %2 {offsets = [8, 0], sizes = [8, 256], strides = [1, 1]} : vector<128x256xf32> to vector<8x256xf32>
    %10 = vector.extract_strided_slice %3 {offsets = [1, 0], sizes = [1, 256], strides = [1, 1]} : vector<16x256xf32> to vector<1x256xf32>
    %11 = vector.broadcast %10 : vector<1x256xf32> to vector<8x256xf32>
    %12 = arith.addf %9, %11 : vector<8x256xf32>
    %c8 = arith.constant 8 : index
    %c0_7 = arith.constant 0 : index
    %13 = vector.load %arg4[%c8, %c0_7] : memref<128x256xf32, #tpu.memory_space<vmem>>, vector<8x256xf32>
    tpu.vector_store %arg4[%c8, %c0_7], %12 {strides = array<i32>} : memref<128x256xf32, #tpu.memory_space<vmem>>, vector<8x256xf32>,
    %14 = vector.extract_strided_slice %2 {offsets = [16, 0], sizes = [8, 256], strides = [1, 1]} : vector<128x256xf32> to vector<8x256xf32>
    %15 = vector.extract_strided_slice %3 {offsets = [2, 0], sizes = [1, 256], strides = [1, 1]} : vector<16x256xf32> to vector<1x256xf32>
    %16 = vector.broadcast %15 : vector<1x256xf32> to vector<8x256xf32>
    %17 = arith.addf %14, %16 : vector<8x256xf32>
    %c16 = arith.constant 16 : index
    %c0_8 = arith.constant 0 : index
    %18 = vector.load %arg4[%c16, %c0_8] : memref<128x256xf32, #tpu.memory_space<vmem>>, vector<8x256xf32>
    tpu.vector_store %arg4[%c16, %c0_8], %17 {strides = array<i32>} : memref<128x256xf32, #tpu.memory_space<vmem>>, vector<8x256xf32>,
    %19 = vector.extract_strided_slice %2 {offsets = [24, 0], sizes = [8, 256], strides = [1, 1]} : vector<128x256xf32> to vector<8x256xf32>
    %20 = vector.extract_strided_slice %3 {offsets = [3, 0], sizes = [1, 256], strides = [1, 1]} : vector<16x256xf32> to vector<1x256xf32>
    %21 = vector.broadcast %20 : vector<1x256xf32> to vector<8x256xf32>
    %22 = arith.addf %19, %21 : vector<8x256xf32>
    %c24 = arith.constant 24 : index
    %c0_9 = arith.constant 0 : index
    %23 = vector.load %arg4[%c24, %c0_9] : memref<128x256xf32, #tpu.memory_space<vmem>>, vector<8x256xf32>
    tpu.vector_store %arg4[%c24, %c0_9], %22 {strides = array<i32>} : memref<128x256xf32, #tpu.memory_space<vmem>>, vector<8x256xf32>,
    %24 = vector.extract_strided_slice %2 {offsets = [32, 0], sizes = [8, 256], strides = [1, 1]} : vector<128x256xf32> to vector<8x256xf32>
    %25 = vector.extract_strided_slice %3 {offsets = [4, 0], sizes = [1, 256], strides = [1, 1]} : vector<16x256xf32> to vector<1x256xf32>
    %26 = vector.broadcast %25 : vector<1x256xf32> to vector<8x256xf32>
    %27 = arith.addf %24, %26 : vector<8x256xf32>
    %c32 = arith.constant 32 : index
    %c0_10 = arith.constant 0 : index
    %28 = vector.load %arg4[%c32, %c0_10] : memref<128x256xf32, #tpu.memory_space<vmem>>, vector<8x256xf32>
    tpu.vector_store %arg4[%c32, %c0_10], %27 {strides = array<i32>} : memref<128x256xf32, #tpu.memory_space<vmem>>, vector<8x256xf32>,
    %29 = vector.extract_strided_slice %2 {offsets = [40, 0], sizes = [8, 256], strides = [1, 1]} : vector<128x256xf32> to vector<8x256xf32>
    %30 = vector.extract_strided_slice %3 {offsets = [5, 0], sizes = [1, 256], strides = [1, 1]} : vector<16x256xf32> to vector<1x256xf32>
    %31 = vector.broadcast %30 : vector<1x256xf32> to vector<8x256xf32>
    %32 = arith.addf %29, %31 : vector<8x256xf32>
    %c40 = arith.constant 40 : index
    %c0_11 = arith.constant 0 : index
    %33 = vector.load %arg4[%c40, %c0_11] : memref<128x256xf32, #tpu.memory_space<vmem>>, vector<8x256xf32>
    tpu.vector_store %arg4[%c40, %c0_11], %32 {strides = array<i32>} : memref<128x256xf32, #tpu.memory_space<vmem>>, vector<8x256xf32>,
    %34 = vector.extract_strided_slice %2 {offsets = [48, 0], sizes = [8, 256], strides = [1, 1]} : vector<128x256xf32> to vector<8x256xf32>
    %35 = vector.extract_strided_slice %3 {offsets = [6, 0], sizes = [1, 256], strides = [1, 1]} : vector<16x256xf32> to vector<1x256xf32>
    %36 = vector.broadcast %35 : vector<1x256xf32> to vector<8x256xf32>
    %37 = arith.addf %34, %36 : vector<8x256xf32>
    %c48 = arith.constant 48 : index
    %c0_12 = arith.constant 0 : index
    %38 = vector.load %arg4[%c48, %c0_12] : memref<128x256xf32, #tpu.memory_space<vmem>>, vector<8x256xf32>
    tpu.vector_store %arg4[%c48, %c0_12], %37 {strides = array<i32>} : memref<128x256xf32, #tpu.memory_space<vmem>>, vector<8x256xf32>,
    %39 = vector.extract_strided_slice %2 {offsets = [56, 0], sizes = [8, 256], strides = [1, 1]} : vector<128x256xf32> to vector<8x256xf32>
    %40 = vector.extract_strided_slice %3 {offsets = [7, 0], sizes = [1, 256], strides = [1, 1]} : vector<16x256xf32> to vector<1x256xf32>
    %41 = vector.broadcast %40 : vector<1x256xf32> to vector<8x256xf32>
    %42 = arith.addf %39, %41 : vector<8x256xf32>
    %c56 = arith.constant 56 : index
    %c0_13 = arith.constant 0 : index
    %43 = vector.load %arg4[%c56, %c0_13] : memref<128x256xf32, #tpu.memory_space<vmem>>, vector<8x256xf32>
    tpu.vector_store %arg4[%c56, %c0_13], %42 {strides = array<i32>} : memref<128x256xf32, #tpu.memory_space<vmem>>, vector<8x256xf32>,
    %44 = vector.extract_strided_slice %2 {offsets = [64, 0], sizes = [8, 256], strides = [1, 1]} : vector<128x256xf32> to vector<8x256xf32>
    %45 = vector.extract_strided_slice %3 {offsets = [8, 0], sizes = [1, 256], strides = [1, 1]} : vector<16x256xf32> to vector<1x256xf32>
    %46 = vector.broadcast %45 : vector<1x256xf32> to vector<8x256xf32>
    %47 = arith.addf %44, %46 : vector<8x256xf32>
    %c64 = arith.constant 64 : index
    %c0_14 = arith.constant 0 : index
    %48 = vector.load %arg4[%c64, %c0_14] : memref<128x256xf32, #tpu.memory_space<vmem>>, vector<8x256xf32>
    tpu.vector_store %arg4[%c64, %c0_14], %47 {strides = array<i32>} : memref<128x256xf32, #tpu.memory_space<vmem>>, vector<8x256xf32>,
    %49 = vector.extract_strided_slice %2 {offsets = [72, 0], sizes = [8, 256], strides = [1, 1]} : vector<128x256xf32> to vector<8x256xf32>
    %50 = vector.extract_strided_slice %3 {offsets = [9, 0], sizes = [1, 256], strides = [1, 1]} : vector<16x256xf32> to vector<1x256xf32>
    %51 = vector.broadcast %50 : vector<1x256xf32> to vector<8x256xf32>
    %52 = arith.addf %49, %51 : vector<8x256xf32>
    %c72 = arith.constant 72 : index
    %c0_15 = arith.constant 0 : index
    %53 = vector.load %arg4[%c72, %c0_15] : memref<128x256xf32, #tpu.memory_space<vmem>>, vector<8x256xf32>
    tpu.vector_store %arg4[%c72, %c0_15], %52 {strides = array<i32>} : memref<128x256xf32, #tpu.memory_space<vmem>>, vector<8x256xf32>,
    %54 = vector.extract_strided_slice %2 {offsets = [80, 0], sizes = [8, 256], strides = [1, 1]} : vector<128x256xf32> to vector<8x256xf32>
    %55 = vector.extract_strided_slice %3 {offsets = [10, 0], sizes = [1, 256], strides = [1, 1]} : vector<16x256xf32> to vector<1x256xf32>
    %56 = vector.broadcast %55 : vector<1x256xf32> to vector<8x256xf32>
    %57 = arith.addf %54, %56 : vector<8x256xf32>
    %c80 = arith.constant 80 : index
    %c0_16 = arith.constant 0 : index
    %58 = vector.load %arg4[%c80, %c0_16] : memref<128x256xf32, #tpu.memory_space<vmem>>, vector<8x256xf32>
    tpu.vector_store %arg4[%c80, %c0_16], %57 {strides = array<i32>} : memref<128x256xf32, #tpu.memory_space<vmem>>, vector<8x256xf32>,
    %59 = vector.extract_strided_slice %2 {offsets = [88, 0], sizes = [8, 256], strides = [1, 1]} : vector<128x256xf32> to vector<8x256xf32>
    %60 = vector.extract_strided_slice %3 {offsets = [11, 0], sizes = [1, 256], strides = [1, 1]} : vector<16x256xf32> to vector<1x256xf32>
    %61 = vector.broadcast %60 : vector<1x256xf32> to vector<8x256xf32>
    %62 = arith.addf %59, %61 : vector<8x256xf32>
    %c88 = arith.constant 88 : index
    %c0_17 = arith.constant 0 : index
    %63 = vector.load %arg4[%c88, %c0_17] : memref<128x256xf32, #tpu.memory_space<vmem>>, vector<8x256xf32>
    tpu.vector_store %arg4[%c88, %c0_17], %62 {strides = array<i32>} : memref<128x256xf32, #tpu.memory_space<vmem>>, vector<8x256xf32>,
    %64 = vector.extract_strided_slice %2 {offsets = [96, 0], sizes = [8, 256], strides = [1, 1]} : vector<128x256xf32> to vector<8x256xf32>
    %65 = vector.extract_strided_slice %3 {offsets = [12, 0], sizes = [1, 256], strides = [1, 1]} : vector<16x256xf32> to vector<1x256xf32>
    %66 = vector.broadcast %65 : vector<1x256xf32> to vector<8x256xf32>
    %67 = arith.addf %64, %66 : vector<8x256xf32>
    %c96 = arith.constant 96 : index
    %c0_18 = arith.constant 0 : index
    %68 = vector.load %arg4[%c96, %c0_18] : memref<128x256xf32, #tpu.memory_space<vmem>>, vector<8x256xf32>
    tpu.vector_store %arg4[%c96, %c0_18], %67 {strides = array<i32>} : memref<128x256xf32, #tpu.memory_space<vmem>>, vector<8x256xf32>,
    %69 = vector.extract_strided_slice %2 {offsets = [104, 0], sizes = [8, 256], strides = [1, 1]} : vector<128x256xf32> to vector<8x256xf32>
    %70 = vector.extract_strided_slice %3 {offsets = [13, 0], sizes = [1, 256], strides = [1, 1]} : vector<16x256xf32> to vector<1x256xf32>
    %71 = vector.broadcast %70 : vector<1x256xf32> to vector<8x256xf32>
    %72 = arith.addf %69, %71 : vector<8x256xf32>
    %c104 = arith.constant 104 : index
    %c0_19 = arith.constant 0 : index
    %73 = vector.load %arg4[%c104, %c0_19] : memref<128x256xf32, #tpu.memory_space<vmem>>, vector<8x256xf32>
    tpu.vector_store %arg4[%c104, %c0_19], %72 {strides = array<i32>} : memref<128x256xf32, #tpu.memory_space<vmem>>, vector<8x256xf32>,
    %74 = vector.extract_strided_slice %2 {offsets = [112, 0], sizes = [8, 256], strides = [1, 1]} : vector<128x256xf32> to vector<8x256xf32>
    %75 = vector.extract_strided_slice %3 {offsets = [14, 0], sizes = [1, 256], strides = [1, 1]} : vector<16x256xf32> to vector<1x256xf32>
    %76 = vector.broadcast %75 : vector<1x256xf32> to vector<8x256xf32>
    %77 = arith.addf %74, %76 : vector<8x256xf32>
    %c112 = arith.constant 112 : index
    %c0_20 = arith.constant 0 : index
    %78 = vector.load %arg4[%c112, %c0_20] : memref<128x256xf32, #tpu.memory_space<vmem>>, vector<8x256xf32>
    tpu.vector_store %arg4[%c112, %c0_20], %77 {strides = array<i32>} : memref<128x256xf32, #tpu.memory_space<vmem>>, vector<8x256xf32>,
    %79 = vector.extract_strided_slice %2 {offsets = [120, 0], sizes = [8, 256], strides = [1, 1]} : vector<128x256xf32> to vector<8x256xf32>
    %80 = vector.extract_strided_slice %3 {offsets = [15, 0], sizes = [1, 256], strides = [1, 1]} : vector<16x256xf32> to vector<1x256xf32>
    %81 = vector.broadcast %80 : vector<1x256xf32> to vector<8x256xf32>
    %82 = arith.addf %79, %81 : vector<8x256xf32>
    %c120 = arith.constant 120 : index
    %c0_21 = arith.constant 0 : index
    %83 = vector.load %arg4[%c120, %c0_21] : memref<128x256xf32, #tpu.memory_space<vmem>>, vector<8x256xf32>
    tpu.vector_store %arg4[%c120, %c0_21], %82 {strides = array<i32>} : memref<128x256xf32, #tpu.memory_space<vmem>>, vector<8x256xf32>,
    return
  }
  func.func @transform_0(%arg0: i32) -> (i32, i32) {
    %c0_i32 = arith.constant 0 : i32
    %c0_i32_0 = arith.constant 0 : i32
    return %arg0, %c0_i32 : i32, i32
  }
  func.func @transform_1(%arg0: i32) -> (i32, i32) {
    %c0_i32 = arith.constant 0 : i32
    %c0_i32_0 = arith.constant 0 : i32
    %c0_i32_1 = arith.constant 0 : i32
    return %c0_i32, %c0_i32_0 : i32, i32
  }
  func.func @transform_2(%arg0: i32) -> (i32, i32) {
    %c0_i32 = arith.constant 0 : i32
    %c0_i32_0 = arith.constant 0 : i32
    return %arg0, %c0_i32 : i32, i32
  }
  func.func @transform_3(%arg0: i32) -> (i32, i32) {
    %c0_i32 = arith.constant 0 : i32
    %c0_i32_0 = arith.constant 0 : i32
    return %arg0, %c0_i32 : i32, i32
  }
}

</mosaic_0001>

<bundles_post_ra>
// kernel: speech_input_forward.1
= control target key start
LH: loop header
LB: loop body
LE: loop exit
PB: predicated region body
PF: predicated region fallthrough
CT: control target
= control target key end

     0   :  { %8 = vsyncpa [#allocation3], 0  ;;  %s1163_s0 = inlined_call_operand.vmem [shape: bf16[512,64], index: 0, kind: input, shape index: {}]   ;;  %s1164_s1 = inlined_call_operand.vmem [shape: bf16[64,256], index: 1, kind: input, shape index: {}]   ;;  %s1165_s2 = inlined_call_operand.vmem [shape: f32[64,256], index: 2, kind: input, shape index: {}]   ;;  %s1166_s3 = inlined_call_operand.hbm [shape: f32[512,256], index: 3, kind: output, shape index: {}]  }
   0x1   :  { %10 = vsyncpa [#allocation3 + $0x1], 0  ;;  %s926_s12 = smov 0   ;;  %s928_s13 = smov 0  }
   0x2   :  { %s930_s14 = smov 0   ;;  %s932_s15 = smov 0  }
   0x3 LB: > { %s947_s16 = sadd.s32 4294967295, %s900_s15   ;;  %s725_s17 = sadd.s32 4294967294, %s900_s15   ;;  %s900_s15 = sphi %s932_s15, %s1172_s15   ;;  %s896_s14 = sphi %s930_s14, %s1171_s14   ;;  %s892_s13 = sphi %s928_s13, %s1170_s13   ;;  %s888_s12 = sphi %s926_s12, %s1169_s12  }
   0x4   : > { %s951_s18 = sadd.s32 1, %s900_s15   ;;  %s96_s19 = sadd.s32 1, %s896_s14 }
   0x5   : > { %s93_s20 = ssub.s32 %s900_s15, %s951_s18  ;;  %p106_p0 = scmp.ne.s32.totalorder %s896_s14, %s892_s13 }
   0x6   : > { %p94_p1 = scmp.eq.s32.totalorder %s93_s20, 0  ;;  %p107_p2 = scmp.eq.s32.totalorder %s947_s16, 3 }
   0x7   : > { %p112_p3 = scmp.ne.s32.totalorder %s892_s13, %s888_s12  ;;  %p113_p4 = scmp.eq.s32.totalorder %s725_s17, 3 }
   0x8   : > { %s962_s21 = scalar_select %p94_p1, %s896_s14, %s96_s19  }
   0x9   : > { %p964_p5 = por %p107_p2, %p106_p0  ;;  %p968_p6 = por %p113_p4, %p112_p3 }
   0xa   : > { %p728_p7 = scmp.ge.s32.totalorder %s900_s15, 1  ;;  %p153_p8 = scmp.lt.s32.totalorder %s900_s15, 5 }
   0xc   : > { %p154_p9 = pnand %p728_p7, %p153_p8 }
   0xd   : > { %v818_v0 = vld [vmem:[%s1164_s1 + $0x4] ss:$8 sps:$4 sm:$0xff] (!%p154_p9)   ;;  %s730_s26 = sshll.u32 (!%p154_p9), %s947_s16, 4  ;;  %v820_v1 = vld [vmem:[%s1164_s1] ss:$8 sps:$4 sm:$0xff] (!%p154_p9)   ;;  %v902_v2 = vmov (!%p154_p9), 0   ;;  %v444_v17 = vlaneseq (!%p154_p9) }
   0xe   : > { %157 = sbr.rel (%p154_p9) target bundleno = 287 (0x11f), region = 32  ;;  %359 = vmatprep.mubr.bf16.mxu0 (!%p154_p9), %v902_v2  ;;  %399 = vmatprep.mubr.bf16.mxu1 (!%p154_p9), %v902_v2  ;;  %p184_p10 = scmp.lt.s32.totalorder (!%p154_p9), %s730_s26, 63  ;;  %v821_v3 = vld [vmem:[%s1164_s1 + $0x14] ss:$8 sps:$4 sm:$0xff] (!%p154_p9)   ;;  %v823_v4 = vld [vmem:[%s1164_s1 + $0x10] ss:$8 sps:$4 sm:$0xff] (!%p154_p9)  }
   0xf   : > { %327 = vmatprep.subr.bf16.mxu0 (!%p154_p9), %v818_v0  ;;  %768 = vmatprep.subr.bf16.mxu1 (!%p154_p9), %v818_v0  ;;  %v824_v5 = vld [vmem:[%s1164_s1 + $0x24] ss:$8 sps:$4 sm:$0xff] (!%p154_p9)   ;;  %v826_v6 = vld [vmem:[%s1164_s1 + $0x20] ss:$8 sps:$4 sm:$0xff] (!%p154_p9)   ;;  %v827_v7 = vld [vmem:[%s1164_s1 + $0x34] ss:$8 sps:$4 sm:$0xff] (!%p154_p9)  }
  0x10   : > { %328 = vmatpush1.bf16.msra.mxu0 (!%p154_p9), %v820_v1  ;;  %772 = vmatpush1.bf16.msra.mxu1 (!%p154_p9), %v820_v1  ;;  %v829_v8 = vld [vmem:[%s1164_s1 + $0x30] ss:$8 sps:$4 sm:$0xff] (!%p154_p9)   ;;  %vm302_vm0 = vcmask (!%p154_p9), 523264   ;;  %s732_s27 = sshll.u32 (!%p154_p9), %s947_s16, 1  ;;  %v1021_v18 = vshrl.u32 (!%p154_p9), %v444_v17, 7  ;;  %s180_s5 = sand.u32 (!%p154_p9), 1, %s892_s13  }
  0x11   : > { %329 = vmatprep.subr.bf16.mxu0 (!%p154_p9), %v821_v3  ;;  %769 = vmatprep.subr.bf16.mxu1 (!%p154_p9), %v821_v3  ;;  %p190_p11 = scmp.lt.s32.totalorder (!%p154_p9), %s732_s27, 7  ;;  %s729_s6 = sshll.u32 (!%p154_p9), %s180_s5, 8 }
  0x12   : > { %v446_v19 = vsub.s32 (!%p154_p9), 0, %v1021_v18  ;;  %v458_v24 = vsub.s32 (!%p154_p9), 1, %v1021_v18  ;;  %v470_v39 = vsub.s32 (!%p154_p9), 2, %v1021_v18  ;;  %s1048_s7 = scalar_lea.vmem (!%p154_p9), [#allocation2], %s729_s6  ;;  %v482_v48 = vsub.s32 (!%p154_p9), 3, %v1021_v18  ;;  %s1122_s17 = scalar_lea.sflag (!%p154_p9), [#allocation3], %s180_s5 }
  0x13   : > { %v494_v1 = vsub.s32 (!%p154_p9), 4, %v1021_v18  ;;  %s651_s9 = sshll.u32 (!%p154_p9), %s1048_s7, 4  ;;  %s903_s20 = smov (!%p154_p9), [#allocation2]   ;;  %s1112_s9 = int_to_ptr.vmem [resolvable:$true] %s651_s9 }
  0x14   : > { %330 = vmatpush1.bf16.msra.mxu0 (!%p154_p9), %v823_v4  ;;  %773 = vmatpush1.bf16.msra.mxu1 (!%p154_p9), %v823_v4  ;;  %s838_s19 = scalar_lea.vmem (!%p154_p9), %s1112_s9, 4096  ;;  %s842_s24 = sshll.u32 (!%p154_p9), %s903_s20, 4  ;;  %s843_s24 = int_to_ptr.vmem [resolvable:$false] %s842_s24 }
  0x15   : > { %s1174_s26 = smov (!%p184_p10, %s730_s26), 63  ;;  %331 = vmatprep.subr.bf16.mxu0 %v824_v5  ;;  %770 = vmatprep.subr.bf16.mxu1 %v824_v5  ;;  %s1176_s27 = smov (!%p190_p11, %s732_s27), 7 }
  0x16   : > { %s731_s8 = sshll.u32 %s1174_s26, 2  ;;  %s765_s28 = sshll.u32 %s1176_s27, 4 }
  0x17   : > { %s993_s11 = scalar_lea.vmem %s1163_s0, %s731_s8  ;;  %s194_s4 = scalar_lea.vmem %s1165_s2, %s765_s28 }
  0x18   : > { %332 = vmatpush1.bf16.msra.mxu0 %v826_v6  ;;  %774 = vmatpush1.bf16.msra.mxu1 %v826_v6  ;;  %v830_v9 = vld [vmem:[%s993_s11] sm:$0xff]   ;;  %v832_v11 = vld [vmem:[%s993_s11 + $0x8] sm:$0xff]   ;;  %v834_v13 = vld [vmem:[%s993_s11 + $0x10] sm:$0xff]   ;;  %s767_s8 = sshll.u32 %s947_s16, 12  ;;  %p839_p12 = scmp.ne.s32.totalorder %s1112_s9, %s838_s19 }
  0x19   : > { %333 = vmatprep.subr.bf16.mxu0 %v827_v7  ;;  %771 = vmatprep.subr.bf16.mxu1 %v827_v7  ;;  %v831_v10 = vld [vmem:[%s993_s11 + $0x20] sm:$0xff]   ;;  %v833_v12 = vld [vmem:[%s993_s11 + $0x28] sm:$0xff]   ;;  %v835_v14 = vld [vmem:[%s993_s11 + $0x30] sm:$0xff]   ;;  %s844_s25 = scalar_lea.vmem %s843_s24, 8192  ;;  %p845_p1 = scmp.lt.s32.totalorder %s1112_s9, %s843_s24 }
  0x1a   : > { %v836_v15 = vld [vmem:[%s993_s11 + $0x18] sm:$0xff]   ;;  %v1028_v20 = vld [vmem:[%s194_s4] sm:$0xff]  ;;  %v1030_v21 = vld [vmem:[%s194_s4 + $0x10] sm:$0xff]  ;;  %p840_p13 = pnand %p839_p12, %p964_p5  ;;  %p846_p2 = scmp.lt.s32.totalorder %s844_s25, %s838_s19 }
  0x1b   : > { %v837_v16 = vld [vmem:[%s993_s11 + $0x38] sm:$0xff]   ;;  %v1032_v22 = vld [vmem:[%s194_s4 + $0x8] sm:$0xff]  ;;  %v447_v25 = vrot.slane %v1028_v20, %v446_v19  ;;  %v543_v26 = vrot.slane %v1030_v21, %v446_v19  ;;  %v459_v29 = vrot.slane %v1028_v20, %v458_v24  ;;  %v555_v30 = vrot.slane %v1030_v21, %v458_v24  ;;  %s1110_s11 = scalar_lea.hbm %s1166_s3, %s767_s8 }
  0x1c   : > { %334 = vmatpush1.bf16.msra.mxu0 %v829_v8  ;;  %775 = vmatpush1.bf16.msra.mxu1 %v829_v8  ;;  %v1034_v23 = vld [vmem:[%s194_s4 + $0x18] sm:$0xff]  ;;  %v451_v27 = vrot.slane %v1032_v22, %v446_v19  ;;  %v463_v33 = vrot.slane %v1032_v22, %v458_v24  ;;  %v471_v51 = vrot.slane %v1028_v20, %v470_v39  ;;  %p841_p0 = pneg %p840_p13  ;;  %p847_p3 = por %p846_p2, %p845_p1 }
  0x1d   : > { %v547_v28 = vrot.slane %v1034_v23, %v446_v19  ;;  %v559_v34 = vrot.slane %v1034_v23, %v458_v24  ;;  %v567_v52 = vrot.slane %v1030_v21, %v470_v39  ;;  %v475_v53 = vrot.slane %v1032_v22, %v470_v39 }
  0x1e   : > { %v571_v54 = vrot.slane %v1034_v23, %v470_v39  ;;  %v483_v55 = vrot.slane %v1028_v20, %v482_v48  ;;  %v579_v56 = vrot.slane %v1030_v21, %v482_v48  ;;  %v487_v59 = vrot.slane %v1032_v22, %v482_v48  ;;  %p848_p4 = pnand %p847_p3, %p841_p0 }
  0x1f   : > { %751 = vmatmul.mubr.msk.bf16.vlgmr.msra.gmra.mrb[0].mxu0 %vm302_vm0, %v830_v9  ;;  %755 = vmatmul.mubr.msk.bf16.vlgmr.msra.gmra.mrb[0].mxu1 %vm302_vm0, %v831_v10  ;;  %v583_v60 = vrot.slane %v1034_v23, %v482_v48  ;;  %v506_v10 = vsub.s32 5, %v1021_v18 }
  0x20   : > { %369 = vmatprep.mubr.bf16.mxu0 %v902_v2  ;;  %409 = vmatprep.mubr.bf16.mxu1 %v902_v2 }
  0x21   : > { %v507_v17 = vrot.slane %v1028_v20, %v506_v10  ;;  %v603_v19 = vrot.slane %v1030_v21, %v506_v10 }
  0x27   : > { %752 = vmatmul.mubr.msk.bf16.gmra.mrb[4].mxu0 %vm302_vm0, %v832_v11  ;;  %756 = vmatmul.mubr.msk.bf16.gmra.mrb[4].mxu1 %vm302_vm0, %v833_v12 }
  0x28   : > { %379 = vmatprep.mubr.bf16.mxu0 %v902_v2  ;;  %419 = vmatprep.mubr.bf16.mxu1 %v902_v2 }
  0x2f   : > { %753 = vmatmul.mubr.msk.bf16.gmra.mrb[8].mxu0 %vm302_vm0, %v834_v13  ;;  %757 = vmatmul.mubr.msk.bf16.gmra.mrb[8].mxu1 %vm302_vm0, %v835_v14  ;;  %v495_v13 = vrot.slane %v1028_v20, %v494_v1  ;;  %v591_v14 = vrot.slane %v1030_v21, %v494_v1 }
  0x30   : > { %389 = vmatprep.mubr.bf16.mxu0 %v902_v2  ;;  %429 = vmatprep.mubr.bf16.mxu1 %v902_v2 }
  0x37   : > { %754 = vmatmul.mubr.msk.bf16.gmra.mrb[12].mxu0 %vm302_vm0, %v836_v15  ;;  %758 = vmatmul.mubr.msk.bf16.gmra.mrb[12].mxu1 %vm302_vm0, %v837_v16  ;;  %v499_v15 = vrot.slane %v1032_v22, %v494_v1  ;;  %v595_v16 = vrot.slane %v1034_v23, %v494_v1 }
  0xf2   : > { %v361_v31 = vpop.f32.mrb[0].mxu0  ;;  %v401_v32 = vpop.f32.mrb[0].mxu1 }
  0xf3   : > { %v452_v35 = vadd.f32 %v447_v25, %v361_v31  ;;  %v548_v36 = vadd.f32 %v543_v26, %v401_v32  ;;  %v363_v37 = vpop.f32.mrb[1].mxu0  ;;  %v403_v38 = vpop.f32.mrb[1].mxu1  ;;  %v511_v26 = vrot.slane %v1032_v22, %v506_v10  ;;  %v518_v32 = vsub.s32 6, %v1021_v18 }
  0xf4   : > { %v453_v40 = vadd.f32 %v451_v27, %v363_v37  ;;  %v549_v41 = vadd.f32 %v547_v28, %v403_v38  ;;  %v365_v42 = vpop.f32.mrb[2].mxu0  ;;  %v405_v43 = vpop.f32.mrb[2].mxu1  ;;  %v607_v27 = vrot.slane %v1034_v23, %v506_v10 }
  0xf5   : > { %454 = vst [vmem:[%s1048_s7] sm:$0xff] %v452_v35  ;;  %550 = vst [vmem:[%s1048_s7 + $0x80] sm:$0xff] %v548_v36  ;;  %v464_v44 = vadd.f32 %v459_v29, %v365_v42  ;;  %v560_v45 = vadd.f32 %v555_v30, %v405_v43  ;;  %v367_v46 = vpop.f32.mrb[3].mxu0  ;;  %v407_v47 = vpop.f32.mrb[3].mxu1 }
  0xf6   : > { %455 = vst [vmem:[%s1048_s7 + $0x8] sm:$0xff] %v453_v40  ;;  %551 = vst [vmem:[%s1048_s7 + $0x88] sm:$0xff] %v549_v41  ;;  %v465_v49 = vadd.f32 %v463_v33, %v367_v46  ;;  %v561_v50 = vadd.f32 %v559_v34, %v407_v47  ;;  %v530_v41 = vsub.s32 7, %v1021_v18  ;;  %v523_v46 = vrot.slane %v1032_v22, %v518_v32 }
  0xf7   : > { %466 = vst [vmem:[%s1048_s7 + $0x10] sm:$0xff] %v464_v44  ;;  %562 = vst [vmem:[%s1048_s7 + $0x90] sm:$0xff] %v560_v45  ;;  %v519_v44 = vrot.slane %v1028_v20, %v518_v32  ;;  %v615_v45 = vrot.slane %v1030_v21, %v518_v32  ;;  %v619_v47 = vrot.slane %v1034_v23, %v518_v32 }
  0xf8   : > { %467 = vst [vmem:[%s1048_s7 + $0x18] sm:$0xff] %v465_v49  ;;  %563 = vst [vmem:[%s1048_s7 + $0x98] sm:$0xff] %v561_v50  ;;  %v531_v18 = vrot.slane %v1028_v20, %v530_v41  ;;  %v627_v48 = vrot.slane %v1030_v21, %v530_v41 }
  0xfa   : > { %v371_v57 = vpop.f32.mrb[4].mxu0  ;;  %v411_v58 = vpop.f32.mrb[4].mxu1 }
  0xfb   : > { %v476_v61 = vadd.f32 %v471_v51, %v371_v57  ;;  %v572_v62 = vadd.f32 %v567_v52, %v411_v58  ;;  %v373_v63 = vpop.f32.mrb[5].mxu0  ;;  %v413_v0 = vpop.f32.mrb[5].mxu1  ;;  %v535_v51 = vrot.slane %v1032_v22, %v530_v41  ;;  %v631_v52 = vrot.slane %v1034_v23, %v530_v41 }
  0xfc   : > { %v477_v2 = vadd.f32 %v475_v53, %v373_v63  ;;  %v573_v3 = vadd.f32 %v571_v54, %v413_v0  ;;  %v375_v4 = vpop.f32.mrb[6].mxu0  ;;  %v415_v5 = vpop.f32.mrb[6].mxu1 }
  0xfd   : > { %478 = vst [vmem:[%s1048_s7 + $0x20] sm:$0xff] %v476_v61  ;;  %574 = vst [vmem:[%s1048_s7 + $0xa0] sm:$0xff] %v572_v62  ;;  %v488_v6 = vadd.f32 %v483_v55, %v375_v4  ;;  %v584_v7 = vadd.f32 %v579_v56, %v415_v5  ;;  %v377_v8 = vpop.f32.mrb[7].mxu0  ;;  %v417_v9 = vpop.f32.mrb[7].mxu1 }
  0xfe   : > { %479 = vst [vmem:[%s1048_s7 + $0x28] sm:$0xff] %v477_v2  ;;  %575 = vst [vmem:[%s1048_s7 + $0xa8] sm:$0xff] %v573_v3  ;;  %v489_v11 = vadd.f32 %v487_v59, %v377_v8  ;;  %v585_v12 = vadd.f32 %v583_v60, %v417_v9 }
  0xff   : > { %490 = vst [vmem:[%s1048_s7 + $0x30] sm:$0xff] %v488_v6  ;;  %586 = vst [vmem:[%s1048_s7 + $0xb0] sm:$0xff] %v584_v7 }
 0x100   : > { %491 = vst [vmem:[%s1048_s7 + $0x38] sm:$0xff] %v489_v11  ;;  %587 = vst [vmem:[%s1048_s7 + $0xb8] sm:$0xff] %v585_v12 }
 0x102   : > { %v381_v24 = vpop.f32.mrb[8].mxu0  ;;  %v421_v25 = vpop.f32.mrb[8].mxu1 }
 0x103   : > { %v500_v28 = vadd.f32 %v495_v13, %v381_v24  ;;  %v596_v29 = vadd.f32 %v591_v14, %v421_v25  ;;  %v383_v30 = vpop.f32.mrb[9].mxu0  ;;  %v423_v31 = vpop.f32.mrb[9].mxu1 }
 0x104   : > { %v501_v33 = vadd.f32 %v499_v15, %v383_v30  ;;  %v597_v34 = vadd.f32 %v595_v16, %v423_v31  ;;  %v385_v35 = vpop.f32.mrb[10].mxu0  ;;  %v425_v36 = vpop.f32.mrb[10].mxu1 }
 0x105   : > { %502 = vst [vmem:[%s1048_s7 + $0x40] sm:$0xff] %v500_v28  ;;  %598 = vst [vmem:[%s1048_s7 + $0xc0] sm:$0xff] %v596_v29  ;;  %v512_v37 = vadd.f32 %v507_v17, %v385_v35  ;;  %v608_v38 = vadd.f32 %v603_v19, %v425_v36  ;;  %v387_v39 = vpop.f32.mrb[11].mxu0  ;;  %v427_v40 = vpop.f32.mrb[11].mxu1 }
 0x106   : > { %503 = vst [vmem:[%s1048_s7 + $0x48] sm:$0xff] %v501_v33  ;;  %599 = vst [vmem:[%s1048_s7 + $0xc8] sm:$0xff] %v597_v34  ;;  %v513_v42 = vadd.f32 %v511_v26, %v387_v39  ;;  %v609_v43 = vadd.f32 %v607_v27, %v427_v40 }
 0x107   : > { %514 = vst [vmem:[%s1048_s7 + $0x50] sm:$0xff] %v512_v37  ;;  %610 = vst [vmem:[%s1048_s7 + $0xd0] sm:$0xff] %v608_v38 }
 0x108   : > { %515 = vst [vmem:[%s1048_s7 + $0x58] sm:$0xff] %v513_v42  ;;  %611 = vst [vmem:[%s1048_s7 + $0xd8] sm:$0xff] %v609_v43 }
 0x10a   : > { %v391_v49 = vpop.f32.mrb[12].mxu0  ;;  %v431_v50 = vpop.f32.mrb[12].mxu1 }
 0x10b   : > { %v524_v53 = vadd.f32 %v519_v44, %v391_v49  ;;  %v620_v54 = vadd.f32 %v615_v45, %v431_v50  ;;  %v393_v55 = vpop.f32.mrb[13].mxu0  ;;  %v433_v56 = vpop.f32.mrb[13].mxu1 }
 0x10c   : > { %v525_v57 = vadd.f32 %v523_v46, %v393_v55  ;;  %v621_v20 = vadd.f32 %v619_v47, %v433_v56  ;;  %v395_v21 = vpop.f32.mrb[14].mxu0  ;;  %v435_v58 = vpop.f32.mrb[14].mxu1 }
 0x10d   : > { %526 = vst [vmem:[%s1048_s7 + $0x60] sm:$0xff] %v524_v53  ;;  %622 = vst [vmem:[%s1048_s7 + $0xe0] sm:$0xff] %v620_v54  ;;  %v536_v22 = vadd.f32 %v531_v18, %v395_v21  ;;  %v632_v23 = vadd.f32 %v627_v48, %v435_v58  ;;  %v397_v59 = vpop.f32.mrb[15].mxu0  ;;  %v437_v60 = vpop.f32.mrb[15].mxu1 }
 0x10e   : > { %527 = vst [vmem:[%s1048_s7 + $0x68] sm:$0xff] %v525_v57  ;;  %623 = vst [vmem:[%s1048_s7 + $0xe8] sm:$0xff] %v621_v20  ;;  %v537_v61 = vadd.f32 %v535_v51, %v397_v59  ;;  %v633_v62 = vadd.f32 %v631_v52, %v437_v60 }
 0x10f   : > { %538 = vst [vmem:[%s1048_s7 + $0x70] sm:$0xff] %v536_v22  ;;  %634 = vst [vmem:[%s1048_s7 + $0xf0] sm:$0xff] %v632_v23 }
 0x110   : > { %539 = vst [vmem:[%s1048_s7 + $0x78] sm:$0xff] %v537_v61  ;;  %635 = vst [vmem:[%s1048_s7 + $0xf8] sm:$0xff] %v633_v62 }
 0x111   : > { %851 = shalt.err (!%p848_p4)
}
 0x112   : > { %s852_s26 = scalar_lea.hbm %s1110_s11, 4096  ;;  %s856_s29 = scalar_lea.hbm %s1166_s3, 16384 }
 0x113   : > { %p853_p7 = scmp.ne.s32.totalorder %s1110_s11, %s852_s26  ;;  %p857_p10 = scmp.lt.u32.totalorder %s1110_s11, %s1166_s3 }
 0x114   : > { %p858_p11 = scmp.lt.u32.totalorder %s856_s29, %s852_s26  ;;  %p860_p13 = scmp.lt.u32.totalorder %s852_s26, %s1110_s11 }
 0x115   : > { %p854_p8 = pnand %p853_p7, %p964_p5 }
 0x116   : > { %p859_p12 = por %p858_p11, %p857_p10 }
 0x117   : > { %p855_p9 = pneg %p854_p8 }
 0x118   : > { %p861_p0 = por %p860_p13, %p859_p12 }
 0x11a   : > { %p862_p1 = pnand %p861_p0, %p855_p9 }
 0x11c   : > { %865 = shalt.err (!%p862_p1)
}
 0x11d   : > { %s904_s5 = smov 256   ;;  %s905_s6 = smov 16  }
 0x11e   : > { %776 = dma.vmem_to_hbm [thread:$0]  (%p964_p5), %s1112_s9, 4096, %s1110_s11, %s1122_s17, %s904_s5, %s904_s5, %s905_s6  }
 0x11f PF: > { %p782_p2 = scmp.ge.s32.totalorder %s900_s15, 2  ;;  %s666_s7 = sand.u32 1, %s888_s12  }
 0x120   : > { %s667_s8 = scalar_lea.sflag [#allocation3], %s666_s7 }
 0x121   : > { %p779_p3 = pnand %p782_p2, %p968_p6 }
 0x123   : > { %883 = dma.done.wait (!%p779_p3), %s667_s8, 4096  }
 0x124   : > { %885 = vsyncadd (!%p779_p3), %s667_s8, 4294963200  ;;  %p13_p4 = scmp.ge.s32.totalorder %s951_s18, 6   ;;  %s1169_s12 = smov %s892_s13 }
 0x125   : > { %s1170_s13 = smov %s896_s14  ;;  %s1171_s14 = smov %s962_s21 }
 0x126   : > { %s1172_s15 = smov %s951_s18  ;;  %15 = sbr.rel (!%p13_p4) target bundleno = 3 (0x3), region = 70 }
 0x12d   :  { %672 = vsyncpa [#allocation3], 1 }
 0x12e   :  { %674 = vsyncpa [#allocation3 + $0x1], 1 }

</bundles_post_ra>
